<compile_context>
chip_gen: v7x
topology: tpu7x:2x2x1
jax: 0.10.0
libtpu: 0.0.40
codegen_flags: <defaults>
</compile_context>

<pallas_src>
import jax
import jax.numpy as jnp
from jax.experimental import pallas as pl
from jax.experimental.pallas import tpu as pltpu


# ---------------------------------------------------------------------------
# Pallas kernel: one MXU matmul per row-tile + fused bias + positional add.
#   out[tm, Dp] = x[tm, C_in] @ w[C_in, Dp] + bias[1, Dp] + pos[tm, Dp]
# Weight / bias block indices are constant across the grid -> fetched once.
# ---------------------------------------------------------------------------
def _proj_kernel(x_ref, w_ref, b_ref, p_ref, o_ref):
    acc = jnp.dot(x_ref[...], w_ref[...], preferred_element_type=jnp.float32)
    o_ref[...] = (acc + b_ref[...] + p_ref[...]).astype(o_ref.dtype)


def _pick_tm(M, target):
    """Row-tile: multiple of 8, <= target, and >=2 grid steps when possible."""
    tm = max(8, (min(target, M) // 8) * 8)
    if pl.cdiv(M, tm) < 2 and M >= 16:
        tm = max(8, ((M // 2) // 8) * 8)   # keep v7x's second TensorCore busy
    return tm


def input_proj_pallas(x_nhwc, pos_nhwc, weight, bias, *, tm_target=512):
    """Fused 1x1 Conv2d(1024 -> d_model) + bias + pos, emitted as (N, H*W, D).

    x_nhwc  : (N, H, W, C_in)        channel-last feature map (any float dtype)
    pos_nhwc: (N, H, W, d_model)     positional encoding (channel-last)
    weight  : (d_model, C_in, 1, 1)  PyTorch conv weight layout
    bias    : (d_model,)
    returns : (N, H*W, d_model)      float32
    """
    N, H, W, C_in = x_nhwc.shape
    d_model = weight.shape[0]
    M = N * H * W
    D_pad = ((d_model + 127) // 128) * 128          # lane-dense output width

    # Matmul operands: bf16 inputs, f32 accumulate on the MXU.
    x2d = x_nhwc.reshape(M, C_in).astype(jnp.bfloat16)
    w2d = weight.reshape(d_model, C_in).T.astype(jnp.bfloat16)      # (C_in, D)
    w2d = jnp.pad(w2d, ((0, 0), (0, D_pad - d_model)))
    b2d = jnp.pad(bias.astype(jnp.float32), (0, D_pad - d_model)).reshape(1, D_pad)
    p2d = pos_nhwc.reshape(M, d_model).astype(jnp.float32)
    p2d = jnp.pad(p2d, ((0, 0), (0, D_pad - d_model)))

    tm = _pick_tm(M, tm_target)
    Mp = pl.cdiv(M, tm) * tm
    if Mp != M:                                      # guard: M not tile-aligned
        x2d = jnp.pad(x2d, ((0, Mp - M), (0, 0)))
        p2d = jnp.pad(p2d, ((0, Mp - M), (0, 0)))

    out = pl.pallas_call(
        _proj_kernel,
        out_shape=jax.ShapeDtypeStruct((Mp, D_pad), jnp.float32),
        grid_spec=pltpu.PrefetchScalarGridSpec(
            num_scalar_prefetch=0,
            grid=(Mp // tm,),
            in_specs=[
                pl.BlockSpec((tm, C_in), lambda i: (i, 0)),     # x row tile
                pl.BlockSpec((C_in, D_pad), lambda i: (0, 0)),  # weight (resident)
                pl.BlockSpec((1, D_pad), lambda i: (0, 0)),     # bias   (resident)
                pl.BlockSpec((tm, D_pad), lambda i: (i, 0)),    # pos row tile
            ],
            out_specs=pl.BlockSpec((tm, D_pad), lambda i: (i, 0)),
        ),
        compiler_params=pltpu.CompilerParams(
            dimension_semantics=("parallel",),
        ),
    )(x2d, w2d, b2d, p2d)

    return out[:M, :d_model].reshape(N, H * W, d_model)


# ---------------------------------------------------------------------------
# OmniParser wrapper (use_fpn=False path)
# ---------------------------------------------------------------------------
class OmniParserPallas:
    def __init__(self, d_model, key):
        self.d_model = d_model
        k_w, k_b = jax.random.split(key)
        # Conv2d(1024, d_model, kernel_size=1) parameters, deterministic init.
        fan_in = 1024
        bound = 1.0 / jnp.sqrt(fan_in)
        # Weight kept in bf16 (matmul input dtype); bias stays f32.
        self.proj_w = jax.random.uniform(
            k_w, (d_model, 1024, 1, 1), jnp.float32, -bound, bound
        ).astype(jnp.bfloat16)
        self.proj_b = jax.random.uniform(
            k_b, (d_model,), jnp.float32, -bound, bound
        )

    # TODO(synk): the backbone is an injected nn.Module with unknown internals;
    # stand-in returns the sample tensor itself as the last feature map
    # (already channel-last + bf16 so the projection kernel needs no layout
    # round trip), an all-False padding mask, and a deterministic sinusoidal
    # positional map in channel-last layout.
    def backbone(self, samples_nchw):
        N, C, H, W = samples_nchw.shape
        feat = jnp.transpose(samples_nchw, (0, 2, 3, 1)).astype(jnp.bfloat16)
        mask = jnp.zeros((N, H, W), dtype=bool)
        yy = jnp.arange(H, dtype=jnp.float32)[:, None, None]
        xx = jnp.arange(W, dtype=jnp.float32)[None, :, None]
        ch = jnp.arange(self.d_model, dtype=jnp.float32)[None, None, :]
        pos = jnp.sin(yy * (ch + 1.0) * 0.1) + jnp.cos(xx * (ch + 1.0) * 0.1)
        pos = jnp.broadcast_to(pos[None], (N, H, W, self.d_model))
        return [feat], mask, [pos]

    # TODO(synk): the transformer is an injected nn.Module with unknown
    # internals; stand-in zeroes padded positions.  The positional encoding is
    # already fused into the projection kernel epilogue (see
    # input_proj_pallas), so `pos` is not re-added here — the composite result
    # equals flatten(proj + pos) * keep, matching the previous behaviour.
    def transformer(self, mem, mask, pos, sequence):
        N, HW, D = mem.shape
        keep = (~mask.reshape(N, HW))[..., None].astype(mem.dtype)
        return mem * keep

    def __call__(self, samples, sequence):
        features, mask, pos = self.backbone(samples)
        src = features[-1]
        p = pos[-1]
        proj_plus_pos = input_proj_pallas(src, p, self.proj_w, self.proj_b)
        return self.transformer(proj_plus_pos, mask, p, sequence)


# ---------------------------------------------------------------------------
if __name__ == "__main__":
    key = jax.random.PRNGKey(0)
    k_model, k_x, k_seq = jax.random.split(key, 3)

    N, C_in, H, W = 2, 1024, 8, 8   # backbone feature map (1024 ch per module)
    d_model = 32
    seq_len = 8

    model = OmniParserPallas(d_model, k_model)

    samples = jax.random.normal(k_x, (N, C_in, H, W), jnp.float32)
    sequence = jax.random.randint(k_seq, (N, seq_len), 0, 100)

    out = model(samples, sequence)
    out = jax.block_until_ready(out)

    # Sanity check of the Pallas hot path (bf16 inputs, f32 accumulation)
    # against a pure-JAX reference on the same bf16-cast operands.
    feats, mask, pos = model.backbone(samples)
    x2d = feats[-1].reshape(-1, C_in).astype(jnp.float32)
    w2d = model.proj_w.reshape(d_model, C_in).T.astype(jnp.float32)
    ref = (x2d @ w2d
           + model.proj_b[None, :]
           + pos[-1].reshape(-1, d_model))
    got = input_proj_pallas(
        feats[-1], pos[-1], model.proj_w, model.proj_b
    ).reshape(-1, d_model)
    assert jnp.allclose(got, ref, atol=1e-3, rtol=1e-3), "input_proj mismatch"
    assert out.shape == (N, H * W, d_model)

    print("KERNEL_OK")
</pallas_src>

<mosaic_0001>
module attributes {stable_mosaic.version = 11 : i64} {
  func.func @_proj_kernel(%arg0: i32, %arg1: memref<64x1024xbf16, #tpu.memory_space<vmem>>, %arg2: memref<1024x128xbf16, #tpu.memory_space<vmem>>, %arg3: memref<1x128xf32, #tpu.memory_space<vmem>>, %arg4: memref<64x128xf32, #tpu.memory_space<vmem>>, %arg5: memref<64x128xf32, #tpu.memory_space<vmem>>) attributes {dimension_semantics = [#tpu.dimension_semantics<parallel>], iteration_bounds = array<i64: 2>, scalar_prefetch = 0 : i64, scratch_operands = 0 : i64, tpu.core_type = #tpu.core_type<tc>, window_params = [{transform_indices = @transform_0, window_bounds = array<i64: 64, 1024>}, {pipeline_mode = #tpu.pipeline_mode<synchronous>, transform_indices = @transform_1, window_bounds = array<i64: 1024, 128>}, {pipeline_mode = #tpu.pipeline_mode<synchronous>, transform_indices = @transform_2, window_bounds = array<i64: 1, 128>}, {transform_indices = @transform_3, window_bounds = array<i64: 64, 128>}, {transform_indices = @transform_4, window_bounds = array<i64: 64, 128>}]} {
    %c0 = arith.constant 0 : index
    %c0_0 = arith.constant 0 : index
    %0 = vector.load %arg1[%c0, %c0_0] : memref<64x1024xbf16, #tpu.memory_space<vmem>>, vector<64x1024xbf16>
    %c0_1 = arith.constant 0 : index
    %c0_2 = arith.constant 0 : index
    %1 = vector.load %arg2[%c0_1, %c0_2] : memref<1024x128xbf16, #tpu.memory_space<vmem>>, vector<1024x128xbf16>
    %cst = arith.constant dense<0.000000e+00> : vector<64x128xf32>
    %2 = tpu.matmul %0, %1, %cst {dimension_numbers = #tpu.dot_dimension_numbers<[1], [0], [0], [1], [0, 0, 1, 1], [], []>} : vector<64x1024xbf16>, vector<1024x128xbf16>, vector<64x128xf32> -> vector<64x128xf32>
    %c0_3 = arith.constant 0 : index
    %c0_4 = arith.constant 0 : index
    %3 = vector.load %arg3[%c0_3, %c0_4] : memref<1x128xf32, #tpu.memory_space<vmem>>, vector<1x128xf32>
    %4 = vector.broadcast %3 : vector<1x128xf32> to vector<64x128xf32>
    %5 = arith.addf %2, %4 : vector<64x128xf32>
    %c0_5 = arith.constant 0 : index
    %c0_6 = arith.constant 0 : index
    %6 = vector.load %arg4[%c0_5, %c0_6] : memref<64x128xf32, #tpu.memory_space<vmem>>, vector<64x128xf32>
    %7 = arith.addf %5, %6 : vector<64x128xf32>
    %c0_7 = arith.constant 0 : index
    %c0_8 = arith.constant 0 : index
    %8 = vector.load %arg5[%c0_7, %c0_8] : memref<64x128xf32, #tpu.memory_space<vmem>>, vector<64x128xf32>
    tpu.vector_store %arg5[%c0_7, %c0_8], %7 {strides = array<i32>} : memref<64x128xf32, #tpu.memory_space<vmem>>, vector<64x128xf32>,
    return
  }
  func.func @transform_0(%arg0: i32) -> (i32, i32) {
    %c0_i32 = arith.constant 0 : i32
    %c0_i32_0 = arith.constant 0 : i32
    return %arg0, %c0_i32 : i32, i32
  }
  func.func @transform_1(%arg0: i32) -> (i32, i32) {
    %c0_i32 = arith.constant 0 : i32
    %c0_i32_0 = arith.constant 0 : i32
    %c0_i32_1 = arith.constant 0 : i32
    return %c0_i32, %c0_i32_0 : i32, i32
  }
  func.func @transform_2(%arg0: i32) -> (i32, i32) {
    %c0_i32 = arith.constant 0 : i32
    %c0_i32_0 = arith.constant 0 : i32
    %c0_i32_1 = arith.constant 0 : i32
    return %c0_i32, %c0_i32_0 : i32, i32
  }
  func.func @transform_3(%arg0: i32) -> (i32, i32) {
    %c0_i32 = arith.constant 0 : i32
    %c0_i32_0 = arith.constant 0 : i32
    return %arg0, %c0_i32 : i32, i32
  }
  func.func @transform_4(%arg0: i32) -> (i32, i32) {
    %c0_i32 = arith.constant 0 : i32
    %c0_i32_0 = arith.constant 0 : i32
    return %arg0, %c0_i32 : i32, i32
  }
}

</mosaic_0001>

<bundles_post_ra>
// kernel: tpu_custom_call.1
= control target key start
LH: loop header
LB: loop body
LE: loop exit
PB: predicated region body
PF: predicated region fallthrough
CT: control target
= control target key end

     0   :  { %s2325_s0 = inlined_call_operand.hbm [shape: bf16[128,1024], index: 0, kind: input, shape index: {}]   ;;  %s2326_s1 = inlined_call_operand.hbm [shape: bf16[1024,128], index: 1, kind: input, shape index: {}]   ;;  %s2327_s2 = inlined_call_operand.vmem [shape: f32[1,128], index: 2, kind: input, shape index: {}]   ;;  %s2328_s3 = inlined_call_operand.hbm [shape: f32[128,128], index: 3, kind: input, shape index: {}]   ;;  %s2329_s4 = inlined_call_operand.hbm [shape: f32[128,128], index: 4, kind: output, shape index: {}]  }
   0x1   :  { %2337 = sst [smem:[#allocation13_spill]] %s2325_s0 }
   0x2   :  { %9 = vsyncpa [#allocation3], 0 }
   0x3   :  { %11 = vsyncpa [#allocation3 + $0x1], 0 }
   0x4   :  { %12 = vsyncpa [#allocation6], 0 }
   0x5   :  { %13 = vsyncpa [#allocation4], 0 }
   0x6   :  { %15 = vsyncpa [#allocation4 + $0x1], 0  ;;  %s2002_s15 = smov 0   ;;  %s2004_s16 = smov 0  }
   0x7   :  { %s2006_s17 = smov 0   ;;  %s2008_s18 = smov 0  }
   0x8 LB: > { %s2023_s19 = sadd.s32 1, %s1963_s18   ;;  %s28_s20 = sadd.s32 1, %s1959_s17  ;;  %s1963_s18 = sphi %s2008_s18, %s2358_s18   ;;  %s1959_s17 = sphi %s2006_s17, %s2357_s17   ;;  %s1955_s16 = sphi %s2004_s16, %s2356_s16   ;;  %s1951_s15 = sphi %s2002_s15, %s2355_s15  }
   0x9   : > { %s25_s21 = ssub.s32 %s1963_s18, %s2023_s19  ;;  %p35_p0 = scmp.ne.s32.totalorder %s1959_s17, %s1955_s16 }
   0xa   : > { %p26_p1 = scmp.eq.s32.totalorder %s25_s21, 0  ;;  %p36_p2 = scmp.eq.s32.totalorder %s1963_s18, 0 }
   0xb   : > { %p1693_p4 = scmp.lt.s32.totalorder %s1963_s18, 2  ;;  %s175_s23 = sand.u32 1, %s1963_s18  }
   0xc   : > { %s2034_s22 = scalar_select %p26_p1, %s1959_s17, %s28_s20  }
   0xd   : > { %p37_p5 = por %p36_p2, %p35_p0  ;;  %s177_s24 = sand.u32 1, %s1959_s17  }
   0xe   : > { %s1389_s25 = sshll.u32 %s177_s24, 8  ;;  %s1504_s26 = sshll.u32 %s1963_s18, 12 }
   0xf   : > { %s2338_s0 = sld [smem:[#allocation13_spill]]  ;;  %s179_s30 = scalar_lea.vmem [#allocation2], %s1389_s25 }
  0x10   : > { %s187_s5 = sshll.u32 %s179_s30, 4  ;;  %p2049_p6 = pnand %p1693_p4, %p37_p5  ;;  %s2053_s5 = int_to_ptr.vmem [resolvable:$true] %s187_s5 }
  0x11   : > { %s2055_s7 = scalar_lea.sflag [#allocation3], %s175_s23 }
  0x12   : > { %s2339_s6 = scalar_select %p2049_p6, 1, 0 }
  0x13   : > { %p2331_p8 = pneg %p2049_p6 }
  0x15   : > { %s2047_s29 = scalar_lea.hbm %s2338_s0, %s1504_s26  ;;  %s1806_s11 = scalar_lea.hbm %s2338_s0, 8192 }
  0x16   : > { %s1801_s8 = scalar_lea.hbm %s2047_s29, 4096  ;;  %p1807_p11 = scmp.lt.u32.totalorder %s2047_s29, %s2338_s0 }
  0x17   : > { %p1802_p7 = scmp.ne.s32.totalorder %s2047_s29, %s1801_s8  ;;  %p1808_p12 = scmp.lt.u32.totalorder %s1806_s11, %s1801_s8 }
  0x18   : > { %p1810_p1 = scmp.lt.u32.totalorder %s1801_s8, %s2047_s29 }
  0x19   : > { %p1804_p9 = pnand %p2331_p8, %p1802_p7  ;;  %p1809_p13 = por %p1808_p12, %p1807_p11 }
  0x1b   : > { %p1805_p10 = pneg %p1804_p9  ;;  %p1811_p2 = por %p1810_p1, %p1809_p13 }
  0x1d   : > { %p1812_p4 = pnand %p1811_p2, %p1805_p10 }
  0x1f   : > { %1815 = shalt.err (!%p1812_p4)
}
  0x20   : > { %s1816_s14 = scalar_lea.vmem %s2053_s5, 4096  ;;  %s1965_s20 = smov [#allocation2]  }
  0x21   : > { %p1817_p5 = scmp.ne.s32.totalorder %s2053_s5, %s1816_s14  ;;  %s1821_s21 = sshll.u32 %s1965_s20, 4  ;;  %s1822_s21 = int_to_ptr.vmem [resolvable:$false] %s1821_s21 }
  0x22   : > { %s1823_s23 = scalar_lea.vmem %s1822_s21, 8192  ;;  %p1824_p3 = scmp.lt.s32.totalorder %s2053_s5, %s1822_s21 }
  0x23   : > { %p1819_p7 = pnand %p1817_p5, %p2331_p8  ;;  %p1825_p11 = scmp.lt.s32.totalorder %s1823_s23, %s1816_s14 }
  0x25   : > { %p1820_p9 = pneg %p1819_p7  ;;  %p1826_p12 = por %p1825_p11, %p1824_p3 }
  0x27   : > { %p1827_p13 = pnand %p1826_p12, %p1820_p9 }
  0x29   : > { %1830 = shalt.err (!%p1827_p13)
}
  0x2a   : > { %s1966_s25 = smov 512   ;;  %s1967_s26 = smov 32  }
  0x2b   : > { %1684 = dma.hbm_to_vmem [thread:$0]  (!%p2049_p6), %s2047_s29, 4096, %s2053_s5, %s2055_s7, %s1966_s25, %s1966_s25, %s1967_s26  }
  0x2c   : > { %s1393_s27 = sshll.u32 %s177_s24, 6  ;;  %s2086_s8 = sadd.s32 4294967295, %s1963_s18  }
  0x2d   : > { %s201_s28 = scalar_lea.vmem [#allocation7], %s1393_s27  ;;  %s1385_s9 = sadd.s32 4294967294, %s1963_s18  }
  0x2e   : > { %s208_s30 = sshll.u32 %s201_s28, 4  ;;  %p41_p3 = scmp.ne.s32.totalorder %s1955_s16, %s1951_s15  ;;  %s2119_s30 = int_to_ptr.vmem [resolvable:$true] %s208_s30 }
  0x2f   : > { %p2330_p10 = scmp.eq.s32.totalorder %s2086_s8, 0  ;;  %p133_p1 = scmp.eq.s32.totalorder %s2086_s8, 1 }
  0x30   : > { %p139_p2 = scmp.eq.s32.totalorder %s1385_s9, 1  ;;  %p1386_p4 = scmp.ge.s32.totalorder %s1963_s18, 1 }
  0x31   : > { %p2096_p5 = por %p2330_p10, %p41_p3  ;;  %p2103_p7 = por %p133_p1, %p35_p0 }
  0x32   : > { %p2107_p9 = por %p139_p2, %p41_p3  ;;  %p146_p11 = scmp.lt.s32.totalorder %s1963_s18, 3 }
  0x33   : > { %s2340_s29 = scalar_select %p2096_p5, 1, 0 }
  0x34   : > { %s2341_s24 = scalar_select %p2103_p7, 1, 0 }
  0x35   : > { %s2342_s5 = scalar_select %p2107_p9, 1, 0 }
  0x36   : > { %p2112_p12 = pnand %p1386_p4, %p146_p11  ;;  %s1968_s11 = smov [#allocation5]  }
  0x37   : > { %s158_s12 = sshll.u32 %s1968_s11, 4  ;;  %s1505_s13 = sshll.u32 %s1963_s18, 10  ;;  %s159_s12 = int_to_ptr.vmem [resolvable:$true] %s158_s12 }
  0x38   : > { %s2343_s10 = scalar_select %p2112_p12, 1, 0 }
  0x39   : > { %p1677_p13 = pneg %p2112_p12  ;;  %s2130_s23 = scalar_lea.hbm %s2328_s3, %s1505_s13 }
  0x3a   : > { %s1831_s27 = scalar_lea.hbm %s2326_s1, 8192 }
  0x3b   : > { %p2123_p0 = pnand %p1677_p13, %p2330_p10  ;;  %p1832_p3 = scmp.ne.s32.totalorder %s2326_s1, %s1831_s27 }
  0x3c   : > { %p1838_p11 = scmp.lt.u32.totalorder %s1831_s27, %s2326_s1 }
  0x3d   : > { %p1833_p1 = pneg %p2123_p0 }
  0x3f   : > { %p1834_p2 = pnand %p1833_p1, %p1832_p3 }
  0x41   : > { %p1835_p4 = pneg %p1834_p2 }
  0x43   : > { %p1840_p13 = pnand %p1838_p11, %p1835_p4 }
  0x45   : > { %1843 = shalt.err (!%p1840_p13)
}
  0x46   : > { %s1844_s13 = scalar_lea.vmem %s159_s12, 8192  ;;  %p1852_p7 = scmp.lt.s32.totalorder %s159_s12, %s159_s12 }
  0x47   : > { %p1845_p10 = scmp.ne.s32.totalorder %s159_s12, %s1844_s13  ;;  %p1853_p5 = scmp.lt.s32.totalorder %s1844_s13, %s1844_s13 }
  0x49   : > { %p1847_p8 = pnand %p1845_p10, %p1833_p1  ;;  %p1854_p12 = por %p1853_p5, %p1852_p7 }
  0x4b   : > { %p1848_p9 = pneg %p1847_p8 }
  0x4d   : > { %p1855_p6 = pnand %p1854_p12, %p1848_p9 }
  0x4f   : > { %1858 = shalt.err (!%p1855_p6)
}
  0x50   : > { %s1969_s20 = smov 64   ;;  %s1970_s0 = smov 4  }
  0x51   : > { %1680 = dma.hbm_to_vmem [thread:$0]  (!%p2123_p0), %s2326_s1, 8192, %s159_s12, [#allocation6], %s1969_s20, %s1969_s20, %s1970_s0  }
  0x52   : > { %s1859_s26 = scalar_lea.hbm %s2130_s23, 1024  ;;  %p2345_p10 = scmp.ne.s32.totalorder %s2339_s6, 0 }
  0x53   : > { %p1860_p8 = scmp.ne.s32.totalorder %s2130_s23, %s1859_s26  ;;  %s1864_s9 = scalar_lea.hbm %s2328_s3, 2048 }
  0x54   : > { %p2346_p3 = pneg %p2345_p10  ;;  %p1865_p6 = scmp.lt.u32.totalorder %s2130_s23, %s2328_s3 }
  0x55   : > { %p1866_p9 = scmp.lt.u32.totalorder %s1864_s9, %s1859_s26  ;;  %p1868_p1 = scmp.lt.u32.totalorder %s1859_s26, %s2130_s23 }
  0x56   : > { %p1862_p5 = pnand %p1860_p8, %p2346_p3 }
  0x57   : > { %p1867_p12 = por %p1866_p9, %p1865_p6 }
  0x58   : > { %p1863_p7 = pneg %p1862_p5 }
  0x59   : > { %p1869_p2 = por %p1868_p1, %p1867_p12 }
  0x5b   : > { %p1870_p4 = pnand %p1869_p2, %p1863_p7 }
  0x5d   : > { %1873 = shalt.err (!%p1870_p4)
}
  0x5e   : > { %s1874_s12 = scalar_lea.vmem %s2119_s30, 1024  ;;  %p2347_p11 = pmov %p2346_p3 }
  0x5f   : > { %p1875_p0 = scmp.ne.s32.totalorder %s2119_s30, %s1874_s12  ;;  %s1971_s14 = smov [#allocation7]  }
  0x60   : > { %s1879_s20 = sshll.u32 %s1971_s14, 4  ;;  %s1880_s20 = int_to_ptr.vmem [resolvable:$false] %s1879_s20 }
  0x61   : > { %p1877_p13 = pnand %p1875_p0, %p2347_p11  ;;  %s1881_s0 = scalar_lea.vmem %s1880_s20, 2048 }
  0x62   : > { %p1882_p3 = scmp.lt.s32.totalorder %s2119_s30, %s1880_s20  ;;  %p1883_p5 = scmp.lt.s32.totalorder %s1881_s0, %s1874_s12 }
  0x63   : > { %p1878_p8 = pneg %p1877_p13 }
  0x64   : > { %p1884_p6 = por %p1883_p5, %p1882_p3 }
  0x66   : > { %p1885_p9 = pnand %p1884_p6, %p1878_p8 }
  0x68   : > { %1888 = shalt.err (!%p1885_p9)
}
  0x69   : > { %s1972_s21 = smov 128   ;;  %s1973_s25 = smov 8  }
  0x6a   : > { %1687 = dma.hbm_to_vmem [thread:$0]  (!%p2345_p10), %s2130_s23, 1024, %s2119_s30, %s2055_s7, %s1972_s21, %s1972_s21, %s1973_s25  }
  0x6b   : > { %p2348_p7 = scmp.ne.s32.totalorder %s2343_s10, 0 }
  0x6c   : > { %s222_s26 = sand.u32 (!%p2348_p7), 1, %s2086_s8   ;;  %s2176_s27 = sand.u32 (!%p2348_p7), 1, %s1955_s16  }
  0x6d   : > { %220 = sbr.rel (%p2348_p7) target bundleno = 451 (0x1c3), region = 36  ;;  %s1397_s28 = sshll.u32 (!%p2348_p7), %s2176_s27, 8 }
  0x6e   : > { %s223_s9 = scalar_lea.sflag (!%p2348_p7), [#allocation3], %s222_s26  ;;  %s2179_s11 = scalar_lea.vmem (!%p2348_p7), [#allocation2], %s1397_s28 }
  0x6f   : > { %p2349_p12 = scmp.ne.s32.totalorder (!%p2348_p7), %s2340_s29, 0 }
  0x74   : > { %1934 = dma.done.wait (%p2349_p12), %s223_s9, 4096  }
  0x75   : > { %1936 = vsyncadd (%p2349_p12), %s223_s9, 4294963200  ;;  %p2350_p10 = scmp.eq.s32.totalorder %s2086_s8, 0 }
  0x77   : > { %1938 = dma.done.wait (%p2350_p10), [#allocation6], 8192   ;;  %p2351_p1 = pmov %p2350_p10 }
  0x78   : > { %s1399_s6 = sshll.u32 %s2176_s27, 6 }
  0x79   : > { %1940 = vsyncadd (%p2351_p1), [#allocation6], 4294959104  ;;  %s2192_s7 = scalar_lea.vmem [#allocation7], %s1399_s6 }
  0x7a   : > { %1942 = dma.done.wait (%p2349_p12), %s223_s9, 1024  }
  0x7b   : > { %1944 = vsyncadd (%p2349_p12), %s223_s9, 4294966272  ;;  %v1737_v0 = vld [vmem:[#allocation5 + $0x40] sm:$0xff]   ;;  %v1741_v4 = vld [vmem:[#allocation5 + $0x48] sm:$0xff]   ;;  %s2252_s10 = scalar_lea.vmem [#allocation8], %s1399_s6  ;;  %s1506_s23 = sshll.u32 %s2086_s8, 10 }
  0x7c   : > { %v1738_v1 = vld [vmem:[#allocation5 + $0xc0] sm:$0xff]   ;;  %1507 = vmatprep.subr.bf16.mxu0 %v1737_v0  ;;  %v1742_v5 = vld [vmem:[#allocation5 + $0xc8] sm:$0xff]   ;;  %v1745_v8 = vld [vmem:[#allocation5 + $0x50] sm:$0xff]   ;;  %s1282_s13 = sshll.u32 %s2252_s10, 4  ;;  %s2277_s20 = scalar_lea.hbm %s2329_s4, %s1506_s23  ;;  %s2279_s13 = int_to_ptr.vmem [resolvable:$true] %s1282_s13 }
  0x7d   : > { %v1739_v2 = vld [vmem:[#allocation5] sm:$0xff]   ;;  %1547 = vmatprep.subr.bf16.mxu1 %v1738_v1  ;;  %v1743_v6 = vld [vmem:[#allocation5 + $0x8] sm:$0xff]   ;;  %v1746_v9 = vld [vmem:[#allocation5 + $0xd0] sm:$0xff]   ;;  %s1269_s0 = scalar_lea.sflag [#allocation4], %s2176_s27  ;;  %s1889_s21 = scalar_lea.vmem %s2279_s13, 1024 }
  0x7e   : > { %v1740_v3 = vld [vmem:[#allocation5 + $0x80] sm:$0xff]   ;;  %1508 = vmatpush3.bf16.msra.mxu0 %v1739_v2  ;;  %v1744_v7 = vld [vmem:[#allocation5 + $0x88] sm:$0xff]   ;;  %v1747_v10 = vld [vmem:[#allocation5 + $0x10] sm:$0xff]   ;;  %p1890_p2 = scmp.ne.s32.totalorder %s2279_s13, %s1889_s21  ;;  %p2352_p4 = scmp.ne.s32.totalorder %s2341_s24, 0 }
  0x7f   : > { %1548 = vmatpush3.bf16.msra.mxu1 %v1740_v3  ;;  %1509 = vmatprep.subr.bf16.mxu0 %v1741_v4  ;;  %v1748_v11 = vld [vmem:[#allocation5 + $0x90] sm:$0xff]   ;;  %v1749_v12 = vld [vmem:[#allocation5 + $0x58] sm:$0xff]   ;;  %v1753_v16 = vld [vmem:[#allocation5 + $0x60] sm:$0xff]   ;;  %s1974_s8 = smov [#allocation8]  }
  0x80   : > { %1549 = vmatprep.subr.bf16.mxu1 %v1742_v5  ;;  %v1750_v13 = vld [vmem:[#allocation5 + $0xd8] sm:$0xff]   ;;  %v1754_v17 = vld [vmem:[#allocation5 + $0xe0] sm:$0xff]   ;;  %v1757_v20 = vld [vmem:[#allocation5 + $0x68] sm:$0xff]   ;;  %p1891_p0 = pnand %p1890_p2, %p2352_p4  ;;  %s1893_s25 = sshll.u32 %s1974_s8, 4  ;;  %s1894_s25 = int_to_ptr.vmem [resolvable:$false] %s1893_s25 }
  0x81   : > { %v1751_v14 = vld [vmem:[#allocation5 + $0x18] sm:$0xff]   ;;  %v1755_v18 = vld [vmem:[#allocation5 + $0x20] sm:$0xff]   ;;  %v1758_v21 = vld [vmem:[#allocation5 + $0xe8] sm:$0xff]   ;;  %s1895_s26 = scalar_lea.vmem %s1894_s25, 2048  ;;  %p1896_p13 = scmp.lt.s32.totalorder %s2279_s13, %s1894_s25 }
  0x82   : > { %1510 = vmatpush3.bf16.msra.mxu0 %v1743_v6  ;;  %v1752_v15 = vld [vmem:[#allocation5 + $0x98] sm:$0xff]   ;;  %v1756_v19 = vld [vmem:[#allocation5 + $0xa0] sm:$0xff]   ;;  %v1759_v22 = vld [vmem:[#allocation5 + $0x28] sm:$0xff]   ;;  %p1892_p11 = pneg %p1891_p0  ;;  %p1897_p8 = scmp.lt.s32.totalorder %s1895_s26, %s1889_s21 }
  0x83   : > { %1550 = vmatpush3.bf16.msra.mxu1 %v1744_v7  ;;  %1511 = vmatprep.subr.bf16.mxu0 %v1745_v8  ;;  %v1760_v23 = vld [vmem:[#allocation5 + $0xa8] sm:$0xff]   ;;  %v1761_v24 = vld [vmem:[#allocation5 + $0x70] sm:$0xff]   ;;  %v1765_v28 = vld [vmem:[#allocation5 + $0x78] sm:$0xff]  }
  0x84   : > { %1551 = vmatprep.subr.bf16.mxu1 %v1746_v9  ;;  %v1762_v25 = vld [vmem:[#allocation5 + $0xf0] sm:$0xff]   ;;  %v1766_v29 = vld [vmem:[#allocation5 + $0xf8] sm:$0xff]   ;;  %v273_v32 = vld [vmem:[%s2179_s11] sm:$0xff]  ;;  %p1898_p3 = por %p1897_p8, %p1896_p13 }
  0x85   : > { %v1763_v26 = vld [vmem:[#allocation5 + $0x30] sm:$0xff]   ;;  %v1767_v30 = vld [vmem:[#allocation5 + $0x38] sm:$0xff]   ;;  %v277_v33 = vld [vmem:[%s2179_s11 + $0x20] sm:$0xff] }
  0x86   : > { %1512 = vmatpush3.bf16.msra.mxu0 %v1747_v10  ;;  %v1764_v27 = vld [vmem:[#allocation5 + $0xb0] sm:$0xff]   ;;  %v1768_v31 = vld [vmem:[#allocation5 + $0xb8] sm:$0xff]   ;;  %v274_v34 = vld [vmem:[%s2179_s11 + $0x8] sm:$0xff]  ;;  %v1402_v35 = vcombine.low %v273_v32, %v277_v33  ;;  %v1403_v36 = vcombine.high %v273_v32, %v277_v33  ;;  %p1899_p5 = pnand %p1898_p3, %p1892_p11 }
  0x87   : > { %1552 = vmatpush3.bf16.msra.mxu1 %v1748_v11  ;;  %1513 = vmatprep.subr.bf16.mxu0 %v1749_v12  ;;  %v278_v37 = vld [vmem:[%s2179_s11 + $0x28] sm:$0xff]  ;;  %v1769_v40 = vld [vmem:[#allocation5 + $0x140] sm:$0xff]   ;;  %v1777_v56 = vld [vmem:[#allocation5 + $0x150] sm:$0xff]  }
  0x88   : > { %1553 = vmatprep.subr.bf16.mxu1 %v1750_v13  ;;  %v1404_v38 = vcombine.low %v274_v34, %v278_v37  ;;  %v1405_v39 = vcombine.high %v274_v34, %v278_v37  ;;  %1016 = vmatprep.mubr.bf16.mxu0 %v1403_v36  ;;  %v1770_v41 = vld [vmem:[#allocation5 + $0x1c0] sm:$0xff]   ;;  %v1773_v44 = vld [vmem:[#allocation5 + $0x148] sm:$0xff]   ;;  %v1778_v57 = vld [vmem:[#allocation5 + $0x1d0] sm:$0xff]  }
  0x89   : > { %v1771_v42 = vld [vmem:[#allocation5 + $0x100] sm:$0xff]   ;;  %v1774_v45 = vld [vmem:[#allocation5 + $0x1c8] sm:$0xff]   ;;  %v1779_v58 = vld [vmem:[#allocation5 + $0x110] sm:$0xff]  }
  0x8a   : > { %1514 = vmatpush3.bf16.msra.mxu0 %v1751_v14  ;;  %1081 = vmatprep.mubr.bf16.mxu1 %v1405_v39  ;;  %v1772_v43 = vld [vmem:[#allocation5 + $0x180] sm:$0xff]   ;;  %v1775_v46 = vld [vmem:[#allocation5 + $0x108] sm:$0xff]   ;;  %v1780_v59 = vld [vmem:[#allocation5 + $0x190] sm:$0xff]  }
  0x8b   : > { %1554 = vmatpush3.bf16.msra.mxu1 %v1752_v15  ;;  %1515 = vmatprep.subr.bf16.mxu0 %v1753_v16  ;;  %v1776_v47 = vld [vmem:[#allocation5 + $0x188] sm:$0xff]   ;;  %v281_v48 = vld [vmem:[%s2179_s11 + $0x40] sm:$0xff]  ;;  %v1781_v60 = vld [vmem:[#allocation5 + $0x158] sm:$0xff]  }
  0x8c   : > { %1555 = vmatprep.subr.bf16.mxu1 %v1754_v17  ;;  %v285_v49 = vld [vmem:[%s2179_s11 + $0x60] sm:$0xff]  ;;  %v282_v51 = vld [vmem:[%s2179_s11 + $0x48] sm:$0xff]  ;;  %v1782_v61 = vld [vmem:[#allocation5 + $0x1d8] sm:$0xff]  }
  0x8d   : > { %v1411_v50 = vcombine.high %v281_v48, %v285_v49  ;;  %v286_v52 = vld [vmem:[%s2179_s11 + $0x68] sm:$0xff]  ;;  %v1410_v53 = vcombine.low %v281_v48, %v285_v49  ;;  %v1783_v62 = vld [vmem:[#allocation5 + $0x118] sm:$0xff]   ;;  %v289_v0 = vld [vmem:[%s2179_s11 + $0x80] sm:$0xff] }
  0x8e   : > { %1516 = vmatpush3.bf16.msra.mxu0 %v1755_v18  ;;  %v1413_v54 = vcombine.high %v282_v51, %v286_v52  ;;  %v1412_v55 = vcombine.low %v282_v51, %v286_v52  ;;  %v1784_v63 = vld [vmem:[#allocation5 + $0x198] sm:$0xff]   ;;  %v293_v1 = vld [vmem:[%s2179_s11 + $0xa0] sm:$0xff]  ;;  %v290_v2 = vld [vmem:[%s2179_s11 + $0x88] sm:$0xff] }
  0x8f   : > { %1556 = vmatpush3.bf16.msra.mxu1 %v1756_v19  ;;  %1517 = vmatprep.subr.bf16.mxu0 %v1757_v20  ;;  %v294_v3 = vld [vmem:[%s2179_s11 + $0xa8] sm:$0xff]  ;;  %v1419_v4 = vcombine.high %v289_v0, %v293_v1  ;;  %v1418_v6 = vcombine.low %v289_v0, %v293_v1  ;;  %v1785_v8 = vld [vmem:[#allocation5 + $0x160] sm:$0xff]   ;;  %v275_v32 = vld [vmem:[%s2179_s11 + $0x10] sm:$0xff] }
  0x90   : > { %1557 = vmatprep.subr.bf16.mxu1 %v1758_v21  ;;  %v1421_v5 = vcombine.high %v290_v2, %v294_v3  ;;  %v1420_v7 = vcombine.low %v290_v2, %v294_v3  ;;  %v1786_v9 = vld [vmem:[#allocation5 + $0x1e0] sm:$0xff]   ;;  %v1789_v12 = vld [vmem:[#allocation5 + $0x168] sm:$0xff]   ;;  %v279_v33 = vld [vmem:[%s2179_s11 + $0x30] sm:$0xff] }
  0x91   : > { %v1787_v10 = vld [vmem:[#allocation5 + $0x120] sm:$0xff]   ;;  %v1790_v13 = vld [vmem:[#allocation5 + $0x1e8] sm:$0xff]   ;;  %v1406_v34 = vcombine.low %v275_v32, %v279_v33  ;;  %v276_v36 = vld [vmem:[%s2179_s11 + $0x18] sm:$0xff] }
  0x92   : > { %1518 = vmatpush3.bf16.msra.mxu0 %v1759_v22  ;;  %v1788_v11 = vld [vmem:[#allocation5 + $0x1a0] sm:$0xff]   ;;  %v1791_v14 = vld [vmem:[#allocation5 + $0x128] sm:$0xff]   ;;  %v280_v37 = vld [vmem:[%s2179_s11 + $0x38] sm:$0xff] }
  0x93   : > { %1558 = vmatpush3.bf16.msra.mxu1 %v1760_v23  ;;  %1519 = vmatprep.subr.bf16.mxu0 %v1761_v24  ;;  %v1792_v15 = vld [vmem:[#allocation5 + $0x1a8] sm:$0xff]   ;;  %v297_v16 = vld [vmem:[%s2179_s11 + $0xc0] sm:$0xff]  ;;  %v1793_v24 = vld [vmem:[#allocation5 + $0x170] sm:$0xff]   ;;  %v1408_v39 = vcombine.low %v276_v36, %v280_v37 }
  0x94   : > { %1559 = vmatprep.subr.bf16.mxu1 %v1762_v25  ;;  %v301_v17 = vld [vmem:[%s2179_s11 + $0xe0] sm:$0xff]  ;;  %v298_v18 = vld [vmem:[%s2179_s11 + $0xc8] sm:$0xff]  ;;  %v1794_v25 = vld [vmem:[#allocation5 + $0x1f0] sm:$0xff]  }
  0x95   : > { %v1427_v19 = vcombine.high %v297_v16, %v301_v17  ;;  %v302_v20 = vld [vmem:[%s2179_s11 + $0xe8] sm:$0xff]  ;;  %v1426_v21 = vcombine.low %v297_v16, %v301_v17  ;;  %v292_v48 = vld [vmem:[%s2179_s11 + $0x98] sm:$0xff]  ;;  %v1401_v2 = vld [vmem:[%s2327_s2] ss:$0 sm:$0xff] }
  0x96   : > { %1520 = vmatpush3.bf16.msra.mxu0 %v1763_v26  ;;  %v1429_v22 = vcombine.high %v298_v18, %v302_v20  ;;  %v1428_v23 = vcombine.low %v298_v18, %v302_v20  ;;  %v1795_v26 = vld [vmem:[#allocation5 + $0x130] sm:$0xff]   ;;  %v296_v49 = vld [vmem:[%s2179_s11 + $0xb8] sm:$0xff] }
  0x97   : > { %1560 = vmatpush3.bf16.msra.mxu1 %v1764_v27  ;;  %1521 = vmatprep.subr.bf16.mxu0 %v1765_v28  ;;  %v1796_v27 = vld [vmem:[#allocation5 + $0x1b0] sm:$0xff]   ;;  %v1797_v28 = vld [vmem:[#allocation5 + $0x178] sm:$0xff]  }
  0x98   : > { %1561 = vmatprep.subr.bf16.mxu1 %v1766_v29  ;;  %v1798_v29 = vld [vmem:[#allocation5 + $0x1f8] sm:$0xff]  }
  0x9a   : > { %1522 = vmatpush3.bf16.msra.mxu0 %v1767_v30  ;;  %v1799_v30 = vld [vmem:[#allocation5 + $0x138] sm:$0xff]  }
  0x9b   : > { %1562 = vmatpush3.bf16.msra.mxu1 %v1768_v31  ;;  %1587 = vmatprep.subr.bf16.mxu0 %v1769_v40  ;;  %v1800_v31 = vld [vmem:[#allocation5 + $0x1b8] sm:$0xff]   ;;  %v1409_v40 = vcombine.high %v276_v36, %v280_v37 }
  0x9c   : > { %1627 = vmatprep.subr.bf16.mxu1 %v1770_v41  ;;  %v287_v41 = vld [vmem:[%s2179_s11 + $0x70] sm:$0xff] }
  0x9d   : > { %1017 = vmatmul.mubr.bf16.vlgmr.msra.gmra.mrb[0].mxu0 %v1402_v35  ;;  %v1407_v35 = vcombine.high %v275_v32, %v279_v33 }
  0x9e   : > { %1082 = vmatmul.mubr.bf16.vlgmr.msra.gmra.mrb[0].mxu1 %v1404_v38  ;;  %1588 = vmatpush3.bf16.msra.mxu0 %v1771_v42  ;;  %v283_v38 = vld [vmem:[%s2179_s11 + $0x50] sm:$0xff]  ;;  %v284_v42 = vld [vmem:[%s2179_s11 + $0x58] sm:$0xff] }
  0x9f   : > { %1628 = vmatpush3.bf16.msra.mxu1 %v1772_v43  ;;  %1589 = vmatprep.subr.bf16.mxu0 %v1773_v44  ;;  %v288_v43 = vld [vmem:[%s2179_s11 + $0x78] sm:$0xff]  ;;  %v1415_v44 = vcombine.high %v283_v38, %v287_v41 }
  0xa0   : > { %1629 = vmatprep.subr.bf16.mxu1 %v1774_v45  ;;  %1024 = vmatprep.mubr.bf16.mxu0 %v1411_v50  ;;  %v1417_v45 = vcombine.high %v284_v42, %v288_v43  ;;  %v1414_v50 = vcombine.low %v283_v38, %v287_v41  ;;  %v1416_v51 = vcombine.low %v284_v42, %v288_v43 }
  0xa1   : > { %1089 = vmatprep.mubr.bf16.mxu1 %v1413_v54  ;;  %v299_v54 = vld [vmem:[%s2179_s11 + $0xd0] sm:$0xff] }
  0xa2   : > { %1590 = vmatpush3.bf16.msra.mxu0 %v1775_v46  ;;  %v291_v46 = vld [vmem:[%s2179_s11 + $0x90] sm:$0xff] }
  0xa3   : > { %1630 = vmatpush3.bf16.msra.mxu1 %v1776_v47  ;;  %1591 = vmatprep.subr.bf16.mxu0 %v1777_v56  ;;  %v295_v47 = vld [vmem:[%s2179_s11 + $0xb0] sm:$0xff]  ;;  %v300_v56 = vld [vmem:[%s2179_s11 + $0xd8] sm:$0xff] }
  0xa4   : > { %1631 = vmatprep.subr.bf16.mxu1 %v1778_v57  ;;  %v1423_v52 = vcombine.high %v291_v46, %v295_v47  ;;  %v304_v57 = vld [vmem:[%s2179_s11 + $0xf8] sm:$0xff] }
  0xa5   : > { %1025 = vmatmul.mubr.bf16.gmra.mrb[4].mxu0 %v1410_v53  ;;  %v1425_v53 = vcombine.high %v292_v48, %v296_v49 }
  0xa6   : > { %1090 = vmatmul.mubr.bf16.gmra.mrb[4].mxu1 %v1412_v55  ;;  %1592 = vmatpush3.bf16.msra.mxu0 %v1779_v58  ;;  %v303_v55 = vld [vmem:[%s2179_s11 + $0xf0] sm:$0xff]  ;;  %v1422_v58 = vcombine.low %v291_v46, %v295_v47 }
  0xa7   : > { %1632 = vmatpush3.bf16.msra.mxu1 %v1780_v59  ;;  %1593 = vmatprep.subr.bf16.mxu0 %v1781_v60  ;;  %v1424_v59 = vcombine.low %v292_v48, %v296_v49  ;;  %v1431_v60 = vcombine.high %v299_v54, %v303_v55 }
  0xa8   : > { %1633 = vmatprep.subr.bf16.mxu1 %v1782_v61  ;;  %1032 = vmatprep.mubr.bf16.mxu0 %v1419_v4  ;;  %v1433_v61 = vcombine.high %v300_v56, %v304_v57 }
  0xa9   : > { %1097 = vmatprep.mubr.bf16.mxu1 %v1421_v5 }
  0xaa   : > { %1594 = vmatpush3.bf16.msra.mxu0 %v1783_v62  ;;  %v1430_v62 = vcombine.low %v299_v54, %v303_v55 }
  0xab   : > { %1634 = vmatpush3.bf16.msra.mxu1 %v1784_v63  ;;  %1595 = vmatprep.subr.bf16.mxu0 %v1785_v8  ;;  %v1432_v63 = vcombine.low %v300_v56, %v304_v57 }
  0xac   : > { %1635 = vmatprep.subr.bf16.mxu1 %v1786_v9 }
  0xad   : > { %1033 = vmatmul.mubr.bf16.gmra.mrb[8].mxu0 %v1418_v6 }
  0xae   : > { %1098 = vmatmul.mubr.bf16.gmra.mrb[8].mxu1 %v1420_v7  ;;  %1596 = vmatpush3.bf16.msra.mxu0 %v1787_v10 }
  0xaf   : > { %1636 = vmatpush3.bf16.msra.mxu1 %v1788_v11  ;;  %1597 = vmatprep.subr.bf16.mxu0 %v1789_v12 }
  0xb0   : > { %1637 = vmatprep.subr.bf16.mxu1 %v1790_v13  ;;  %1040 = vmatprep.mubr.bf16.mxu0 %v1427_v19 }
  0xb1   : > { %1105 = vmatprep.mubr.bf16.mxu1 %v1429_v22 }
  0xb2   : > { %1598 = vmatpush3.bf16.msra.mxu0 %v1791_v14 }
  0xb3   : > { %1638 = vmatpush3.bf16.msra.mxu1 %v1792_v15  ;;  %1599 = vmatprep.subr.bf16.mxu0 %v1793_v24 }
  0xb4   : > { %1639 = vmatprep.subr.bf16.mxu1 %v1794_v25 }
  0xb5   : > { %1041 = vmatmul.mubr.bf16.gmra.mrb[12].mxu0 %v1426_v21 }
  0xb6   : > { %1106 = vmatmul.mubr.bf16.gmra.mrb[12].mxu1 %v1428_v23  ;;  %1600 = vmatpush3.bf16.msra.mxu0 %v1795_v26 }
  0xb7   : > { %1640 = vmatpush3.bf16.msra.mxu1 %v1796_v27  ;;  %1601 = vmatprep.subr.bf16.mxu0 %v1797_v28 }
  0xb8   : > { %1641 = vmatprep.subr.bf16.mxu1 %v1798_v29  ;;  %1146 = vmatprep.mubr.bf16.mxu0 %v1407_v35 }
  0xb9   : > { %1211 = vmatprep.mubr.bf16.mxu1 %v1409_v40 }
  0xba   : > { %1602 = vmatpush3.bf16.msra.mxu0 %v1799_v30 }
  0xbb   : > { %1642 = vmatpush3.bf16.msra.mxu1 %v1800_v31 }
  0xbd   : > { %1147 = vmatmul.mubr.bf16.vlgmr.msra.gmra.mrb[16].mxu0 %v1406_v34 }
  0xbe   : > { %1212 = vmatmul.mubr.bf16.vlgmr.msra.gmra.mrb[16].mxu1 %v1408_v39  ;;  %1154 = vmatprep.mubr.bf16.mxu0 %v1415_v44 }
  0xbf   : > { %1219 = vmatprep.mubr.bf16.mxu1 %v1417_v45 }
  0xc5   : > { %1155 = vmatmul.mubr.bf16.gmra.mrb[20].mxu0 %v1414_v50 }
  0xc6   : > { %1220 = vmatmul.mubr.bf16.gmra.mrb[20].mxu1 %v1416_v51  ;;  %1162 = vmatprep.mubr.bf16.mxu0 %v1423_v52 }
  0xc7   : > { %1227 = vmatprep.mubr.bf16.mxu1 %v1425_v53 }
  0xcd   : > { %1163 = vmatmul.mubr.bf16.gmra.mrb[24].mxu0 %v1422_v58 }
  0xce   : > { %1228 = vmatmul.mubr.bf16.gmra.mrb[24].mxu1 %v1424_v59  ;;  %1170 = vmatprep.mubr.bf16.mxu0 %v1431_v60 }
  0xcf   : > { %1235 = vmatprep.mubr.bf16.mxu1 %v1433_v61 }
  0xd5   : > { %1171 = vmatmul.mubr.bf16.gmra.mrb[28].mxu0 %v1430_v62 }
  0xd6   : > { %1236 = vmatmul.mubr.bf16.gmra.mrb[28].mxu1 %v1432_v63 }
 0x170   : > { %v1523_v0 = vpop.f32.mrb[0].mxu0 }
 0x171   : > { %v1563_v1 = vpop.f32.mrb[0].mxu1  ;;  %v1524_v3 = vpop.f32.mrb[1].mxu0 }
 0x172   : > { %v1525_v4 = vadd.f32 %v1524_v3, %v1523_v0  ;;  %v1564_v5 = vpop.f32.mrb[1].mxu1  ;;  %v1526_v6 = vpop.f32.mrb[2].mxu0 }
 0x173   : > { %v1565_v7 = vadd.f32 %v1564_v5, %v1563_v1  ;;  %v1566_v8 = vpop.f32.mrb[2].mxu1  ;;  %v1527_v9 = vpop.f32.mrb[3].mxu0 }
 0x174   : > { %v1019_v10 = vadd.f32 %v1525_v4, %v1401_v2  ;;  %v1528_v11 = vadd.f32 %v1527_v9, %v1526_v6  ;;  %v1567_v12 = vpop.f32.mrb[3].mxu1 }
 0x175   : > { %v1568_v13 = vadd.f32 %v1567_v12, %v1566_v8 }
 0x176   : > { %v1084_v14 = vadd.f32 %v1565_v7, %v1019_v10  ;;  %v1022_v15 = vadd.f32 %v1528_v11, %v1401_v2 }
 0x178   : > { %v2233_v16 = vadd.f32 %v1568_v13, %v1022_v15  ;;  %v1529_v17 = vpop.f32.mrb[4].mxu0  ;;  %v1244_v15 = vld [vmem:[%s2192_s7] sm:$0xff] }
 0x179   : > { %v1569_v18 = vpop.f32.mrb[4].mxu1  ;;  %v1530_v19 = vpop.f32.mrb[5].mxu0 }
 0x17a   : > { %v1531_v20 = vadd.f32 %v1530_v19, %v1529_v17  ;;  %v1570_v21 = vpop.f32.mrb[5].mxu1  ;;  %v1532_v22 = vpop.f32.mrb[6].mxu0  ;;  %v1245_v19 = vld [vmem:[%s2192_s7 + $0x8] sm:$0xff] }
 0x17b   : > { %v1571_v23 = vadd.f32 %v1570_v21, %v1569_v18  ;;  %v1572_v24 = vpop.f32.mrb[6].mxu1  ;;  %v1533_v25 = vpop.f32.mrb[7].mxu0 }
 0x17c   : > { %v1027_v26 = vadd.f32 %v1531_v20, %v1401_v2  ;;  %v1534_v27 = vadd.f32 %v1533_v25, %v1532_v22  ;;  %v1573_v28 = vpop.f32.mrb[7].mxu1 }
 0x17d   : > { %v1574_v29 = vadd.f32 %v1573_v28, %v1572_v24 }
 0x17e   : > { %v2235_v30 = vadd.f32 %v1571_v23, %v1027_v26  ;;  %v1030_v31 = vadd.f32 %v1534_v27, %v1401_v2 }
 0x180   : > { %v2237_v32 = vadd.f32 %v1574_v29, %v1030_v31  ;;  %v1535_v33 = vpop.f32.mrb[8].mxu0 }
 0x181   : > { %v1575_v34 = vpop.f32.mrb[8].mxu1  ;;  %v1536_v35 = vpop.f32.mrb[9].mxu0 }
 0x182   : > { %v1576_v36 = vpop.f32.mrb[9].mxu1  ;;  %v1537_v37 = vadd.f32 %v1536_v35, %v1535_v33  ;;  %v1538_v39 = vpop.f32.mrb[10].mxu0  ;;  %v1246_v35 = vld [vmem:[%s2192_s7 + $0x10] sm:$0xff] }
 0x183   : > { %v1577_v38 = vadd.f32 %v1576_v36, %v1575_v34  ;;  %v1578_v40 = vpop.f32.mrb[10].mxu1  ;;  %v1539_v41 = vpop.f32.mrb[11].mxu0 }
 0x184   : > { %v1579_v42 = vpop.f32.mrb[11].mxu1  ;;  %v1035_v43 = vadd.f32 %v1537_v37, %v1401_v2  ;;  %v1540_v44 = vadd.f32 %v1539_v41, %v1538_v39  ;;  %v1247_v39 = vld [vmem:[%s2192_s7 + $0x18] sm:$0xff] }
 0x185   : > { %v1580_v45 = vadd.f32 %v1579_v42, %v1578_v40 }
 0x186   : > { %v2239_v46 = vadd.f32 %v1577_v38, %v1035_v43  ;;  %v1038_v47 = vadd.f32 %v1540_v44, %v1401_v2 }
 0x188   : > { %v2241_v48 = vadd.f32 %v1580_v45, %v1038_v47  ;;  %v1541_v49 = vpop.f32.mrb[12].mxu0 }
 0x189   : > { %v1581_v50 = vpop.f32.mrb[12].mxu1  ;;  %v1542_v51 = vpop.f32.mrb[13].mxu0 }
 0x18a   : > { %v1543_v52 = vadd.f32 %v1542_v51, %v1541_v49  ;;  %v1582_v53 = vpop.f32.mrb[13].mxu1  ;;  %v1544_v54 = vpop.f32.mrb[14].mxu0 }
 0x18b   : > { %v1583_v55 = vadd.f32 %v1582_v53, %v1581_v50  ;;  %v1584_v56 = vpop.f32.mrb[14].mxu1  ;;  %v1545_v57 = vpop.f32.mrb[15].mxu0 }
 0x18c   : > { %v1043_v58 = vadd.f32 %v1543_v52, %v1401_v2  ;;  %v1546_v59 = vadd.f32 %v1545_v57, %v1544_v54  ;;  %v1585_v60 = vpop.f32.mrb[15].mxu1 }
 0x18d   : > { %v1586_v61 = vadd.f32 %v1585_v60, %v1584_v56 }
 0x18e   : > { %v2243_v62 = vadd.f32 %v1583_v55, %v1043_v58  ;;  %v1046_v63 = vadd.f32 %v1546_v59, %v1401_v2  ;;  %v1248_v55 = vld [vmem:[%s2192_s7 + $0x20] sm:$0xff]  ;;  %v1249_v59 = vld [vmem:[%s2192_s7 + $0x28] sm:$0xff] }
 0x190   : > { %v2245_v0 = vadd.f32 %v1586_v61, %v1046_v63  ;;  %v1603_v1 = vpop.f32.mrb[16].mxu0 }
 0x191   : > { %v1643_v3 = vpop.f32.mrb[16].mxu1  ;;  %v1604_v4 = vpop.f32.mrb[17].mxu0 }
 0x192   : > { %v1605_v5 = vadd.f32 %v1604_v4, %v1603_v1  ;;  %v1644_v6 = vpop.f32.mrb[17].mxu1  ;;  %v1606_v7 = vpop.f32.mrb[18].mxu0 }
 0x193   : > { %v1645_v8 = vadd.f32 %v1644_v6, %v1643_v3  ;;  %v1646_v9 = vpop.f32.mrb[18].mxu1  ;;  %v1607_v10 = vpop.f32.mrb[19].mxu0 }
 0x194   : > { %v1149_v11 = vadd.f32 %v1605_v5, %v1084_v14  ;;  %v1608_v12 = vadd.f32 %v1607_v10, %v1606_v7  ;;  %v1647_v13 = vpop.f32.mrb[19].mxu1 }
 0x195   : > { %v1648_v17 = vadd.f32 %v1647_v13, %v1646_v9 }
 0x196   : > { %v1214_v18 = vadd.f32 %v1645_v8, %v1149_v11  ;;  %v1152_v2 = vadd.f32 %v1608_v12, %v2233_v16  ;;  %v1250_v12 = vld [vmem:[%s2192_s7 + $0x30] sm:$0xff] }
 0x198   : > { %v1252_v20 = vadd.f32 %v1244_v15, %v1214_v18  ;;  %v1217_v21 = vadd.f32 %v1648_v17, %v1152_v2  ;;  %v1609_v22 = vpop.f32.mrb[20].mxu0  ;;  %v1251_v18 = vld [vmem:[%s2192_s7 + $0x38] sm:$0xff] }
 0x199   : > { %v1649_v23 = vpop.f32.mrb[20].mxu1  ;;  %v1610_v24 = vpop.f32.mrb[21].mxu0 }
 0x19a   : > { %1260 = vst [vmem:[%s2252_s10] sm:$0xff] %v1252_v20  ;;  %v1253_v14 = vadd.f32 %v1245_v19, %v1217_v21  ;;  %v1611_v25 = vadd.f32 %v1610_v24, %v1609_v22  ;;  %v1650_v26 = vpop.f32.mrb[21].mxu1  ;;  %v1612_v27 = vpop.f32.mrb[22].mxu0 }
 0x19b   : > { %v1651_v28 = vadd.f32 %v1650_v26, %v1649_v23  ;;  %v1652_v16 = vpop.f32.mrb[22].mxu1  ;;  %v1613_v29 = vpop.f32.mrb[23].mxu0 }
 0x19c   : > { %1261 = vst [vmem:[%s2252_s10 + $0x8] sm:$0xff] %v1253_v14  ;;  %v1157_v31 = vadd.f32 %v1611_v25, %v2235_v30  ;;  %v1614_v33 = vadd.f32 %v1613_v29, %v1612_v27  ;;  %v1653_v34 = vpop.f32.mrb[23].mxu1 }
 0x19d   : > { %v1654_v36 = vadd.f32 %v1653_v34, %v1652_v16 }
 0x19e   : > { %v1222_v37 = vadd.f32 %v1651_v28, %v1157_v31  ;;  %v1160_v38 = vadd.f32 %v1614_v33, %v2237_v32 }
 0x1a0   : > { %v1254_v40 = vadd.f32 %v1246_v35, %v1222_v37  ;;  %v1225_v41 = vadd.f32 %v1654_v36, %v1160_v38  ;;  %v1615_v42 = vpop.f32.mrb[24].mxu0 }
 0x1a1   : > { %v1655_v43 = vpop.f32.mrb[24].mxu1  ;;  %v1616_v44 = vpop.f32.mrb[25].mxu0 }
 0x1a2   : > { %1262 = vst [vmem:[%s2252_s10 + $0x10] sm:$0xff] %v1254_v40  ;;  %v1255_v45 = vadd.f32 %v1247_v39, %v1225_v41  ;;  %v1617_v47 = vadd.f32 %v1616_v44, %v1615_v42  ;;  %v1656_v30 = vpop.f32.mrb[25].mxu1  ;;  %v1618_v49 = vpop.f32.mrb[26].mxu0 }
 0x1a3   : > { %v1657_v50 = vadd.f32 %v1656_v30, %v1655_v43  ;;  %v1658_v51 = vpop.f32.mrb[26].mxu1  ;;  %v1619_v52 = vpop.f32.mrb[27].mxu0 }
 0x1a4   : > { %1263 = vst [vmem:[%s2252_s10 + $0x18] sm:$0xff] %v1255_v45  ;;  %v1165_v32 = vadd.f32 %v1617_v47, %v2239_v46  ;;  %v1620_v53 = vadd.f32 %v1619_v52, %v1618_v49  ;;  %v1659_v54 = vpop.f32.mrb[27].mxu1 }
 0x1a5   : > { %v1660_v56 = vadd.f32 %v1659_v54, %v1658_v51 }
 0x1a6   : > { %v1230_v57 = vadd.f32 %v1657_v50, %v1165_v32  ;;  %v1168_v58 = vadd.f32 %v1620_v53, %v2241_v48 }
 0x1a8   : > { %v1256_v60 = vadd.f32 %v1248_v55, %v1230_v57  ;;  %v1233_v61 = vadd.f32 %v1660_v56, %v1168_v58  ;;  %v1621_v63 = vpop.f32.mrb[28].mxu0 }
 0x1a9   : > { %v1661_v1 = vpop.f32.mrb[28].mxu1  ;;  %v1622_v3 = vpop.f32.mrb[29].mxu0 }
 0x1aa   : > { %1264 = vst [vmem:[%s2252_s10 + $0x20] sm:$0xff] %v1256_v60  ;;  %v1257_v4 = vadd.f32 %v1249_v59, %v1233_v61  ;;  %v1623_v46 = vadd.f32 %v1622_v3, %v1621_v63  ;;  %v1662_v5 = vpop.f32.mrb[29].mxu1  ;;  %v1624_v6 = vpop.f32.mrb[30].mxu0 }
 0x1ab   : > { %v1663_v7 = vadd.f32 %v1662_v5, %v1661_v1  ;;  %v1664_v8 = vpop.f32.mrb[30].mxu1  ;;  %v1625_v9 = vpop.f32.mrb[31].mxu0 }
 0x1ac   : > { %1265 = vst [vmem:[%s2252_s10 + $0x28] sm:$0xff] %v1257_v4  ;;  %v1173_v48 = vadd.f32 %v1623_v46, %v2243_v62  ;;  %v1626_v10 = vadd.f32 %v1625_v9, %v1624_v6  ;;  %v1665_v11 = vpop.f32.mrb[31].mxu1 }
 0x1ad   : > { %v1666_v13 = vadd.f32 %v1665_v11, %v1664_v8 }
 0x1ae   : > { %v1238_v15 = vadd.f32 %v1663_v7, %v1173_v48  ;;  %v1176_v17 = vadd.f32 %v1626_v10, %v2245_v0 }
 0x1b0   : > { %v1258_v2 = vadd.f32 %v1250_v12, %v1238_v15  ;;  %v1241_v19 = vadd.f32 %v1666_v13, %v1176_v17 }
 0x1b2   : > { %1266 = vst [vmem:[%s2252_s10 + $0x30] sm:$0xff] %v1258_v2  ;;  %v1259_v62 = vadd.f32 %v1251_v18, %v1241_v19 }
 0x1b4   : > { %1267 = vst [vmem:[%s2252_s10 + $0x38] sm:$0xff] %v1259_v62 }
 0x1b5   : > { %1902 = shalt.err (!%p1899_p5)
}
 0x1b6   : > { %s1903_s28 = scalar_lea.hbm %s2277_s20, 1024  ;;  %s1907_s6 = scalar_lea.hbm %s2329_s4, 2048 }
 0x1b7   : > { %p1904_p6 = scmp.ne.s32.totalorder %s2277_s20, %s1903_s28  ;;  %p1908_p12 = scmp.lt.u32.totalorder %s2277_s20, %s2329_s4 }
 0x1b8   : > { %p1909_p10 = scmp.lt.u32.totalorder %s1907_s6, %s1903_s28  ;;  %p1911_p2 = scmp.lt.u32.totalorder %s1903_s28, %s2277_s20 }
 0x1b9   : > { %p1905_p9 = pnand %p1904_p6, %p2352_p4 }
 0x1ba   : > { %p1910_p1 = por %p1909_p10, %p1908_p12 }
 0x1bb   : > { %p1906_p7 = pneg %p1905_p9 }
 0x1bc   : > { %p1912_p0 = por %p1911_p2, %p1910_p1 }
 0x1be   : > { %p1913_p11 = pnand %p1912_p0, %p1906_p7 }
 0x1c0   : > { %1916 = shalt.err (!%p1913_p11)
}
 0x1c1   : > { %s1975_s29 = smov 128   ;;  %s1976_s10 = smov 8  }
 0x1c2   : > { %1675 = dma.vmem_to_hbm [thread:$0]  (%p2352_p4), %s2279_s13, 1024, %s2277_s20, %s1269_s0, %s1975_s29, %s1975_s29, %s1976_s10  }
 0x1c3 PF: > { %s1297_s23 = sand.u32 1, %s1951_s15   ;;  %p2353_p13 = scmp.ne.s32.totalorder %s2342_s5, 0 }
 0x1c4   : > { %p2354_p8 = scmp.ge.s32.totalorder %s1963_s18, 2  ;;  %s1298_s12 = scalar_lea.sflag [#allocation4], %s1297_s23 }
 0x1c6   : > { %p1689_p3 = pnand %p2354_p8, %p2353_p13 }
 0x1c8   : > { %1946 = dma.done.wait (!%p1689_p3), %s1298_s12, 1024  }
 0x1c9   : > { %1948 = vsyncadd (!%p1689_p3), %s1298_s12, 4294966272  ;;  %p18_p5 = scmp.ge.s32.totalorder %s2023_s19, 4   ;;  %s2355_s15 = smov %s1955_s16 }
 0x1ca   : > { %s2356_s16 = smov %s1959_s17  ;;  %s2357_s17 = smov %s2034_s22 }
 0x1cb   : > { %s2358_s18 = smov %s2023_s19  ;;  %20 = sbr.rel (!%p18_p5) target bundleno = 8 (0x8), region = 96 }
 0x1d2   :  { %1303 = vsyncpa [#allocation3], 1 }
 0x1d3   :  { %1305 = vsyncpa [#allocation3 + $0x1], 1 }
 0x1d4   :  { %1306 = vsyncpa [#allocation6], 1 }
 0x1d5   :  { %1307 = vsyncpa [#allocation4], 1 }
 0x1d6   :  { %1309 = vsyncpa [#allocation4 + $0x1], 1 }

</bundles_post_ra>
